<compile_context>
chip_gen: v5e
topology: v5e:2x2
jax: 0.10.0
libtpu: 0.0.40
codegen_flags: <defaults>
</compile_context>

<pallas_src>
import functools

import jax
import jax.numpy as jnp
from jax.experimental import pallas as pl
from jax.experimental.pallas import tpu as pltpu


# ---------------------------------------------------------------------------
# Fused kernel: one (batch, position-tile) block per grid step.
# Layout inside the kernel: channels on sublanes, positions on lanes.
# ---------------------------------------------------------------------------
def _subfold_kernel(seed_ref, f1_ref, f2_ref,
                    w1s_ref, w2_ref, b2_ref, w3_ref, b3_ref,
                    w4s_ref, w5_ref, b5_ref, w6_ref, b6_ref,
                    out_ref, *, matmul_dtype):
    f32 = jnp.float32
    s = seed_ref[...].astype(f32)                      # (3, tn)

    def k3_fma(w, a):
        # (Cout, 3) x (3, tn) contraction as three VPU broadcast-FMAs:
        # K=3 would waste MXU contraction depth and serialize on the MRF.
        return (w[:, 0:1] * a[0:1, :]
                + w[:, 1:2] * a[1:2, :]
                + w[:, 2:3] * a[2:3, :])

    # ---------------- folding1: conv+bn+relu -> conv+bn+relu -> conv --------
    # feature gemv + bias were hoisted into f1_ref (H, 1), broadcast over tn.
    h = jnp.maximum(k3_fma(w1s_ref[...].astype(f32), s) + f1_ref[...], 0.0)
    h = jnp.dot(w2_ref[...], h.astype(matmul_dtype),
                preferred_element_type=f32) + b2_ref[...]
    h = jnp.maximum(h, 0.0)
    fd1 = jnp.dot(w3_ref[...], h.astype(matmul_dtype),
                  preferred_element_type=f32) + b3_ref[...]        # (3, tn)

    # ---------------- folding2 ----------------------------------------------
    g = jnp.maximum(k3_fma(w4s_ref[...].astype(f32), fd1) + f2_ref[...], 0.0)
    g = jnp.dot(w5_ref[...], g.astype(matmul_dtype),
                preferred_element_type=f32) + b5_ref[...]
    g = jnp.maximum(g, 0.0)
    fd2 = jnp.dot(w6_ref[...], g.astype(matmul_dtype),
                  preferred_element_type=f32) + b6_ref[...]        # (3, tn)

    out_ref[...] = fd2.astype(out_ref.dtype)


def _choose_tile(n, bs, cap=4096):
    """Largest lane-dense (multiple-of-128) position tile that divides n."""
    if n % 128 != 0:
        return n                      # block == full extent is always legal
    if bs == 1 and n >= 256:
        cap = min(cap, n // 2)        # >=2 grid steps so v7x's 2nd TC has work
    best = 128
    for cand in (256, 512, 1024, 2048, 4096):
        if cand <= cap and n % cand == 0:
            best = cand
    return best


def _fold_bn(w, b, gamma, beta, mean, var, eps=1e-5):
    """Fold eval-mode BatchNorm1d into a preceding 1x1 conv. w: (Cout, Cin)."""
    scale = gamma / jnp.sqrt(var + eps)
    return w * scale[:, None], (b - mean) * scale + beta


def subfold_forward(x, c, params, *, matmul_dtype=jnp.float32):
    """x: (bs, in_channel) global feature, c: (bs, 3, N) seed grid.
    Returns fd2: (bs, 3, N), matching the PyTorch module.
    matmul_dtype=jnp.bfloat16 is recommended on v6e/v7x (f32 accumulation)."""
    bs, cin = x.shape
    n = c.shape[2]
    f32 = jnp.float32
    xf = x.astype(f32)

    # Fold BN into the convs in f32 (before any lower-precision cast).
    w1, b1 = _fold_bn(params["w1"], params["b1"], params["g1"], params["be1"],
                      params["m1"], params["v1"])
    w2, b2 = _fold_bn(params["w2"], params["b2"], params["g2"], params["be2"],
                      params["m2"], params["v2"])
    w3, b3 = params["w3"], params["b3"]
    w4, b4 = _fold_bn(params["w4"], params["b4"], params["g4"], params["be4"],
                      params["m4"], params["v4"])
    w5, b5 = _fold_bn(params["w5"], params["b5"], params["g5"], params["be5"],
                      params["m5"], params["v5"])
    w6, b6 = params["w6"], params["b6"]

    H2, H = w2.shape  # hidden_dim//2, hidden_dim

    # Split conv1/conv4 weights: seed part (K=3, in-kernel VPU FMA) and feature
    # part (position-invariant -> hoisted XLA gemv, bias pre-folded).
    w1s, w4s = w1[:, :3], w4[:, :3]                       # (H, 3)
    f1 = (xf @ w1[:, 3:].T.astype(f32) + b1)[:, :, None]  # (bs, H, 1)
    f2 = (xf @ w4[:, 3:].T.astype(f32) + b4)[:, :, None]

    md = matmul_dtype
    w2m, w3m, w5m, w6m = (a.astype(md) for a in (w2, w3, w5, w6))
    b2c, b3c, b5c, b6c = (a.astype(f32)[:, None] for a in (b2, b3, b5, b6))

    tn = _choose_tile(n, bs)
    grid = (bs, n // tn)
    wconst = lambda b, t: (0, 0)      # grid-invariant weights stay in VMEM

    # Advisory cost hint (feature gemvs now live outside the kernel).
    flops = int(4 * bs * n * (3 * H + H * H2 + 3 * H2))
    bytes_accessed = int(
        c.size * c.dtype.itemsize + bs * 3 * n * x.dtype.itemsize
        + 4 * (f1.size + f2.size)
        + sum(a.size * a.dtype.itemsize
              for a in (w1s, w4s, w2m, w3m, w5m, w6m, b2c, b3c, b5c, b6c)))

    kernel = functools.partial(_subfold_kernel, matmul_dtype=md)

    return pl.pallas_call(
        kernel,
        out_shape=jax.ShapeDtypeStruct((bs, 3, n), x.dtype),
        grid=grid,
        in_specs=[
            pl.BlockSpec((None, 3, tn), lambda b, t: (b, 0, t)),   # seed tile
            pl.BlockSpec((None, H, 1), lambda b, t: (b, 0, 0)),    # hoisted feat 1
            pl.BlockSpec((None, H, 1), lambda b, t: (b, 0, 0)),    # hoisted feat 2
            pl.BlockSpec((H, 3), wconst),                          # folding1
            pl.BlockSpec((H2, H), wconst),
            pl.BlockSpec((H2, 1), wconst),
            pl.BlockSpec((3, H2), wconst),
            pl.BlockSpec((3, 1), wconst),
            pl.BlockSpec((H, 3), wconst),                          # folding2
            pl.BlockSpec((H2, H), wconst),
            pl.BlockSpec((H2, 1), wconst),
            pl.BlockSpec((3, H2), wconst),
            pl.BlockSpec((3, 1), wconst),
        ],
        out_specs=pl.BlockSpec((None, 3, tn), lambda b, t: (b, 0, t)),
        compiler_params=pltpu.CompilerParams(
            dimension_semantics=("parallel", "parallel")),
        cost_estimate=pl.CostEstimate(
            flops=flops, transcendentals=0, bytes_accessed=bytes_accessed),
    )(c, f1.astype(f32), f2.astype(f32),
      w1s.astype(f32), w2m, b2c, w3m, b3c,
      w4s.astype(f32), w5m, b5c, w6m, b6c)


# ---------------------------------------------------------------------------
# Pure-JAX reference (explicit conv -> eval-mode BN -> ReLU), for correctness.
# ---------------------------------------------------------------------------
def subfold_ref(x, c, params, eps=1e-5):
    bs, cin = x.shape
    n = c.shape[2]
    features = jnp.broadcast_to(x[:, :, None], (bs, cin, n))

    def conv(inp, w, b):
        return jnp.einsum("oc,bcn->bon", w, inp) + b[None, :, None]

    def bn(inp, gamma, beta, mean, var):
        return (gamma[None, :, None] * (inp - mean[None, :, None])
                / jnp.sqrt(var[None, :, None] + eps) + beta[None, :, None])

    x1 = jnp.concatenate([c, features], axis=1)
    h = jnp.maximum(bn(conv(x1, params["w1"], params["b1"]),
                       params["g1"], params["be1"], params["m1"], params["v1"]), 0.0)
    h = jnp.maximum(bn(conv(h, params["w2"], params["b2"]),
                       params["g2"], params["be2"], params["m2"], params["v2"]), 0.0)
    fd1 = conv(h, params["w3"], params["b3"])

    x2 = jnp.concatenate([fd1, features], axis=1)
    g = jnp.maximum(bn(conv(x2, params["w4"], params["b4"]),
                       params["g4"], params["be4"], params["m4"], params["v4"]), 0.0)
    g = jnp.maximum(bn(conv(g, params["w5"], params["b5"]),
                       params["g5"], params["be5"], params["m5"], params["v5"]), 0.0)
    fd2 = conv(g, params["w6"], params["b6"])
    return fd2


if __name__ == "__main__":
    # Small shapes consistent with the module:
    #   in_channel=32, step=4 -> num_sample=16, hidden_dim=64, batch=2
    bs, in_channel, step, hidden = 2, 32, 4, 64
    n = step * step
    h2 = hidden // 2

    key = jax.random.PRNGKey(0)
    keys = jax.random.split(key, 32)
    ki = iter(keys)

    def w(shape, scale=0.1):
        return scale * jax.random.normal(next(ki), shape, dtype=jnp.float32)

    def bn_params(ch):
        return dict(
            gamma=0.5 + jax.random.uniform(next(ki), (ch,), dtype=jnp.float32),
            beta=0.05 * jax.random.normal(next(ki), (ch,), dtype=jnp.float32),
            mean=0.1 * jax.random.normal(next(ki), (ch,), dtype=jnp.float32),
            var=0.5 + jax.random.uniform(next(ki), (ch,), dtype=jnp.float32),
        )

    x = jax.random.normal(next(ki), (bs, in_channel), dtype=jnp.float32)
    c = jax.random.normal(next(ki), (bs, 3, n), dtype=jnp.float32)

    bn1, bn2 = bn_params(hidden), bn_params(h2)
    bn4, bn5 = bn_params(hidden), bn_params(h2)
    params = {
        # folding1
        "w1": w((hidden, in_channel + 3)), "b1": w((hidden,), 0.05),
        "g1": bn1["gamma"], "be1": bn1["beta"], "m1": bn1["mean"], "v1": bn1["var"],
        "w2": w((h2, hidden)), "b2": w((h2,), 0.05),
        "g2": bn2["gamma"], "be2": bn2["beta"], "m2": bn2["mean"], "v2": bn2["var"],
        "w3": w((3, h2)), "b3": w((3,), 0.05),
        # folding2
        "w4": w((hidden, in_channel + 3)), "b4": w((hidden,), 0.05),
        "g4": bn4["gamma"], "be4": bn4["beta"], "m4": bn4["mean"], "v4": bn4["var"],
        "w5": w((h2, hidden)), "b5": w((h2,), 0.05),
        "g5": bn5["gamma"], "be5": bn5["beta"], "m5": bn5["mean"], "v5": bn5["var"],
        "w6": w((3, h2)), "b6": w((3,), 0.05),
    }

    ref = subfold_ref(x, c, params)

    # f32 path (exact vs reference).
    out = jax.block_until_ready(subfold_forward(x, c, params))
    assert out.shape == (bs, 3, n), f"bad shape {out.shape}"
    assert jnp.allclose(out, ref, atol=1e-4, rtol=1e-4), "f32 mismatch vs reference"

    # bf16 MXU-operand path (recommended on v6e/v7x; f32 accumulate, f32 VPU).
    out_bf16 = jax.block_until_ready(
        subfold_forward(x, c, params, matmul_dtype=jnp.bfloat16))
    assert jnp.allclose(out_bf16, ref, atol=5e-2, rtol=5e-2), "bf16 mismatch vs reference"

    # TODO(synk): BatchNorm1d training-mode (batch statistics) is not
    # implemented; the kernel folds eval-mode running stats into the convs.
    print("KERNEL_OK")
</pallas_src>

<mosaic_0001>
module attributes {stable_mosaic.version = 11 : i64} {
  func.func @_subfold_kernel(%arg0: i32, %arg1: i32, %arg2: memref<1x3x16xf32, #tpu.memory_space<vmem>>, %arg3: memref<1x64x1xf32, #tpu.memory_space<vmem>>, %arg4: memref<1x64x1xf32, #tpu.memory_space<vmem>>, %arg5: memref<64x3xf32, #tpu.memory_space<vmem>>, %arg6: memref<32x64xf32, #tpu.memory_space<vmem>>, %arg7: memref<32x1xf32, #tpu.memory_space<vmem>>, %arg8: memref<3x32xf32, #tpu.memory_space<vmem>>, %arg9: memref<3x1xf32, #tpu.memory_space<vmem>>, %arg10: memref<64x3xf32, #tpu.memory_space<vmem>>, %arg11: memref<32x64xf32, #tpu.memory_space<vmem>>, %arg12: memref<32x1xf32, #tpu.memory_space<vmem>>, %arg13: memref<3x32xf32, #tpu.memory_space<vmem>>, %arg14: memref<3x1xf32, #tpu.memory_space<vmem>>, %arg15: memref<1x3x16xf32, #tpu.memory_space<vmem>>) attributes {dimension_semantics = [#tpu.dimension_semantics<parallel>, #tpu.dimension_semantics<parallel>], iteration_bounds = array<i64: 2, 1>, scalar_prefetch = 0 : i64, scratch_operands = 0 : i64, tpu.core_type = #tpu.core_type<tc>, window_params = [{transform_indices = @transform_0, window_bounds = array<i64: 1, 3, 16>}, {transform_indices = @transform_1, window_bounds = array<i64: 1, 64, 1>}, {transform_indices = @transform_2, window_bounds = array<i64: 1, 64, 1>}, {pipeline_mode = #tpu.pipeline_mode<synchronous>, transform_indices = @transform_3, window_bounds = array<i64: 64, 3>}, {pipeline_mode = #tpu.pipeline_mode<synchronous>, transform_indices = @transform_4, window_bounds = array<i64: 32, 64>}, {pipeline_mode = #tpu.pipeline_mode<synchronous>, transform_indices = @transform_5, window_bounds = array<i64: 32, 1>}, {pipeline_mode = #tpu.pipeline_mode<synchronous>, transform_indices = @transform_6, window_bounds = array<i64: 3, 32>}, {pipeline_mode = #tpu.pipeline_mode<synchronous>, transform_indices = @transform_7, window_bounds = array<i64: 3, 1>}, {pipeline_mode = #tpu.pipeline_mode<synchronous>, transform_indices = @transform_8, window_bounds = array<i64: 64, 3>}, {pipeline_mode = #tpu.pipeline_mode<synchronous>, transform_indices = @transform_9, window_bounds = array<i64: 32, 64>}, {pipeline_mode = #tpu.pipeline_mode<synchronous>, transform_indices = @transform_10, window_bounds = array<i64: 32, 1>}, {pipeline_mode = #tpu.pipeline_mode<synchronous>, transform_indices = @transform_11, window_bounds = array<i64: 3, 32>}, {pipeline_mode = #tpu.pipeline_mode<synchronous>, transform_indices = @transform_12, window_bounds = array<i64: 3, 1>}, {transform_indices = @transform_13, window_bounds = array<i64: 1, 3, 16>}]} {
    %c0 = arith.constant 0 : index
    %c0_0 = arith.constant 0 : index
    %c0_1 = arith.constant 0 : index
    %0 = vector.load %arg2[%c0, %c0_0, %c0_1] : memref<1x3x16xf32, #tpu.memory_space<vmem>>, vector<1x3x16xf32>
    %1 = vector.shape_cast %0 : vector<1x3x16xf32> to vector<3x16xf32>
    %c0_2 = arith.constant 0 : index
    %c0_3 = arith.constant 0 : index
    %2 = vector.load %arg5[%c0_2, %c0_3] : memref<64x3xf32, #tpu.memory_space<vmem>>, vector<64x3xf32>
    %3 = vector.extract_strided_slice %2 {offsets = [0, 0], sizes = [64, 1], strides = [1, 1]} : vector<64x3xf32> to vector<64x1xf32>
    %4 = vector.extract_strided_slice %1 {offsets = [0, 0], sizes = [1, 16], strides = [1, 1]} : vector<3x16xf32> to vector<1x16xf32>
    %5 = vector.broadcast %3 : vector<64x1xf32> to vector<64x16xf32>
    %6 = vector.broadcast %4 : vector<1x16xf32> to vector<64x16xf32>
    %7 = arith.mulf %5, %6 : vector<64x16xf32>
    %8 = vector.extract_strided_slice %2 {offsets = [0, 1], sizes = [64, 1], strides = [1, 1]} : vector<64x3xf32> to vector<64x1xf32>
    %9 = vector.extract_strided_slice %1 {offsets = [1, 0], sizes = [1, 16], strides = [1, 1]} : vector<3x16xf32> to vector<1x16xf32>
    %10 = vector.broadcast %8 : vector<64x1xf32> to vector<64x16xf32>
    %11 = vector.broadcast %9 : vector<1x16xf32> to vector<64x16xf32>
    %12 = arith.mulf %10, %11 : vector<64x16xf32>
    %13 = arith.addf %7, %12 : vector<64x16xf32>
    %14 = vector.extract_strided_slice %2 {offsets = [0, 2], sizes = [64, 1], strides = [1, 1]} : vector<64x3xf32> to vector<64x1xf32>
    %15 = vector.extract_strided_slice %1 {offsets = [2, 0], sizes = [1, 16], strides = [1, 1]} : vector<3x16xf32> to vector<1x16xf32>
    %16 = vector.broadcast %14 : vector<64x1xf32> to vector<64x16xf32>
    %17 = vector.broadcast %15 : vector<1x16xf32> to vector<64x16xf32>
    %18 = arith.mulf %16, %17 : vector<64x16xf32>
    %19 = arith.addf %13, %18 : vector<64x16xf32>
    %c0_4 = arith.constant 0 : index
    %c0_5 = arith.constant 0 : index
    %c0_6 = arith.constant 0 : index
    %20 = vector.load %arg3[%c0_4, %c0_5, %c0_6] : memref<1x64x1xf32, #tpu.memory_space<vmem>>, vector<1x64x1xf32>
    %21 = vector.shape_cast %20 : vector<1x64x1xf32> to vector<64x1xf32>
    %22 = vector.broadcast %21 : vector<64x1xf32> to vector<64x16xf32>
    %23 = arith.addf %19, %22 : vector<64x16xf32>
    %cst = arith.constant 0.000000e+00 : f32
    %24 = vector.broadcast %cst : f32 to vector<64x16xf32>
    %25 = arith.maximumf %23, %24 : vector<64x16xf32>
    %c0_7 = arith.constant 0 : index
    %c0_8 = arith.constant 0 : index
    %26 = vector.load %arg6[%c0_7, %c0_8] : memref<32x64xf32, #tpu.memory_space<vmem>>, vector<32x64xf32>
    %cst_9 = arith.constant dense<0.000000e+00> : vector<32x16xf32>
    %27 = tpu.matmul %26, %25, %cst_9 {dimension_numbers = #tpu.dot_dimension_numbers<[1], [0], [0], [1], [0, 0, 1, 1], [], []>} : vector<32x64xf32>, vector<64x16xf32>, vector<32x16xf32> -> vector<32x16xf32>
    %c0_10 = arith.constant 0 : index
    %c0_11 = arith.constant 0 : index
    %28 = vector.load %arg7[%c0_10, %c0_11] : memref<32x1xf32, #tpu.memory_space<vmem>>, vector<32x1xf32>
    %29 = vector.broadcast %28 : vector<32x1xf32> to vector<32x16xf32>
    %30 = arith.addf %27, %29 : vector<32x16xf32>
    %cst_12 = arith.constant 0.000000e+00 : f32
    %31 = vector.broadcast %cst_12 : f32 to vector<32x16xf32>
    %32 = arith.maximumf %30, %31 : vector<32x16xf32>
    %c0_13 = arith.constant 0 : index
    %c0_14 = arith.constant 0 : index
    %33 = vector.load %arg8[%c0_13, %c0_14] : memref<3x32xf32, #tpu.memory_space<vmem>>, vector<3x32xf32>
    %cst_15 = arith.constant dense<0.000000e+00> : vector<3x16xf32>
    %34 = tpu.matmul %33, %32, %cst_15 {dimension_numbers = #tpu.dot_dimension_numbers<[1], [0], [0], [1], [0, 0, 1, 1], [], []>} : vector<3x32xf32>, vector<32x16xf32>, vector<3x16xf32> -> vector<3x16xf32>
    %c0_16 = arith.constant 0 : index
    %c0_17 = arith.constant 0 : index
    %35 = vector.load %arg9[%c0_16, %c0_17] : memref<3x1xf32, #tpu.memory_space<vmem>>, vector<3x1xf32>
    %36 = vector.broadcast %35 : vector<3x1xf32> to vector<3x16xf32>
    %37 = arith.addf %34, %36 : vector<3x16xf32>
    %c0_18 = arith.constant 0 : index
    %c0_19 = arith.constant 0 : index
    %38 = vector.load %arg10[%c0_18, %c0_19] : memref<64x3xf32, #tpu.memory_space<vmem>>, vector<64x3xf32>
    %39 = vector.extract_strided_slice %38 {offsets = [0, 0], sizes = [64, 1], strides = [1, 1]} : vector<64x3xf32> to vector<64x1xf32>
    %40 = vector.extract_strided_slice %37 {offsets = [0, 0], sizes = [1, 16], strides = [1, 1]} : vector<3x16xf32> to vector<1x16xf32>
    %41 = vector.broadcast %39 : vector<64x1xf32> to vector<64x16xf32>
    %42 = vector.broadcast %40 : vector<1x16xf32> to vector<64x16xf32>
    %43 = arith.mulf %41, %42 : vector<64x16xf32>
    %44 = vector.extract_strided_slice %38 {offsets = [0, 1], sizes = [64, 1], strides = [1, 1]} : vector<64x3xf32> to vector<64x1xf32>
    %45 = vector.extract_strided_slice %37 {offsets = [1, 0], sizes = [1, 16], strides = [1, 1]} : vector<3x16xf32> to vector<1x16xf32>
    %46 = vector.broadcast %44 : vector<64x1xf32> to vector<64x16xf32>
    %47 = vector.broadcast %45 : vector<1x16xf32> to vector<64x16xf32>
    %48 = arith.mulf %46, %47 : vector<64x16xf32>
    %49 = arith.addf %43, %48 : vector<64x16xf32>
    %50 = vector.extract_strided_slice %38 {offsets = [0, 2], sizes = [64, 1], strides = [1, 1]} : vector<64x3xf32> to vector<64x1xf32>
    %51 = vector.extract_strided_slice %37 {offsets = [2, 0], sizes = [1, 16], strides = [1, 1]} : vector<3x16xf32> to vector<1x16xf32>
    %52 = vector.broadcast %50 : vector<64x1xf32> to vector<64x16xf32>
    %53 = vector.broadcast %51 : vector<1x16xf32> to vector<64x16xf32>
    %54 = arith.mulf %52, %53 : vector<64x16xf32>
    %55 = arith.addf %49, %54 : vector<64x16xf32>
    %c0_20 = arith.constant 0 : index
    %c0_21 = arith.constant 0 : index
    %c0_22 = arith.constant 0 : index
    %56 = vector.load %arg4[%c0_20, %c0_21, %c0_22] : memref<1x64x1xf32, #tpu.memory_space<vmem>>, vector<1x64x1xf32>
    %57 = vector.shape_cast %56 : vector<1x64x1xf32> to vector<64x1xf32>
    %58 = vector.broadcast %57 : vector<64x1xf32> to vector<64x16xf32>
    %59 = arith.addf %55, %58 : vector<64x16xf32>
    %cst_23 = arith.constant 0.000000e+00 : f32
    %60 = vector.broadcast %cst_23 : f32 to vector<64x16xf32>
    %61 = arith.maximumf %59, %60 : vector<64x16xf32>
    %c0_24 = arith.constant 0 : index
    %c0_25 = arith.constant 0 : index
    %62 = vector.load %arg11[%c0_24, %c0_25] : memref<32x64xf32, #tpu.memory_space<vmem>>, vector<32x64xf32>
    %cst_26 = arith.constant dense<0.000000e+00> : vector<32x16xf32>
    %63 = tpu.matmul %62, %61, %cst_26 {dimension_numbers = #tpu.dot_dimension_numbers<[1], [0], [0], [1], [0, 0, 1, 1], [], []>} : vector<32x64xf32>, vector<64x16xf32>, vector<32x16xf32> -> vector<32x16xf32>
    %c0_27 = arith.constant 0 : index
    %c0_28 = arith.constant 0 : index
    %64 = vector.load %arg12[%c0_27, %c0_28] : memref<32x1xf32, #tpu.memory_space<vmem>>, vector<32x1xf32>
    %65 = vector.broadcast %64 : vector<32x1xf32> to vector<32x16xf32>
    %66 = arith.addf %63, %65 : vector<32x16xf32>
    %cst_29 = arith.constant 0.000000e+00 : f32
    %67 = vector.broadcast %cst_29 : f32 to vector<32x16xf32>
    %68 = arith.maximumf %66, %67 : vector<32x16xf32>
    %c0_30 = arith.constant 0 : index
    %c0_31 = arith.constant 0 : index
    %69 = vector.load %arg13[%c0_30, %c0_31] : memref<3x32xf32, #tpu.memory_space<vmem>>, vector<3x32xf32>
    %cst_32 = arith.constant dense<0.000000e+00> : vector<3x16xf32>
    %70 = tpu.matmul %69, %68, %cst_32 {dimension_numbers = #tpu.dot_dimension_numbers<[1], [0], [0], [1], [0, 0, 1, 1], [], []>} : vector<3x32xf32>, vector<32x16xf32>, vector<3x16xf32> -> vector<3x16xf32>
    %c0_33 = arith.constant 0 : index
    %c0_34 = arith.constant 0 : index
    %71 = vector.load %arg14[%c0_33, %c0_34] : memref<3x1xf32, #tpu.memory_space<vmem>>, vector<3x1xf32>
    %72 = vector.broadcast %71 : vector<3x1xf32> to vector<3x16xf32>
    %73 = arith.addf %70, %72 : vector<3x16xf32>
    %c0_35 = arith.constant 0 : index
    %c0_36 = arith.constant 0 : index
    %c0_37 = arith.constant 0 : index
    %74 = vector.load %arg15[%c0_35, %c0_36, %c0_37] : memref<1x3x16xf32, #tpu.memory_space<vmem>>, vector<1x3x16xf32>
    %75 = vector.shape_cast %74 : vector<1x3x16xf32> to vector<3x16xf32>
    %76 = vector.shape_cast %73 : vector<3x16xf32> to vector<1x3x16xf32>
    tpu.vector_store %arg15[%c0_35, %c0_36, %c0_37], %76 {strides = array<i32>} : memref<1x3x16xf32, #tpu.memory_space<vmem>>, vector<1x3x16xf32>,
    return
  }
  func.func @transform_0(%arg0: i32, %arg1: i32) -> (i32, i32, i32) {
    %c0_i32 = arith.constant 0 : i32
    %c0_i32_0 = arith.constant 0 : i32
    return %arg0, %c0_i32, %arg1 : i32, i32, i32
  }
  func.func @transform_1(%arg0: i32, %arg1: i32) -> (i32, i32, i32) {
    %c0_i32 = arith.constant 0 : i32
    %c0_i32_0 = arith.constant 0 : i32
    %c0_i32_1 = arith.constant 0 : i32
    return %arg0, %c0_i32, %c0_i32_0 : i32, i32, i32
  }
  func.func @transform_2(%arg0: i32, %arg1: i32) -> (i32, i32, i32) {
    %c0_i32 = arith.constant 0 : i32
    %c0_i32_0 = arith.constant 0 : i32
    %c0_i32_1 = arith.constant 0 : i32
    return %arg0, %c0_i32, %c0_i32_0 : i32, i32, i32
  }
  func.func @transform_3(%arg0: i32, %arg1: i32) -> (i32, i32) {
    %c0_i32 = arith.constant 0 : i32
    %c0_i32_0 = arith.constant 0 : i32
    %c0_i32_1 = arith.constant 0 : i32
    return %c0_i32, %c0_i32_0 : i32, i32
  }
  func.func @transform_4(%arg0: i32, %arg1: i32) -> (i32, i32) {
    %c0_i32 = arith.constant 0 : i32
    %c0_i32_0 = arith.constant 0 : i32
    %c0_i32_1 = arith.constant 0 : i32
    return %c0_i32, %c0_i32_0 : i32, i32
  }
  func.func @transform_5(%arg0: i32, %arg1: i32) -> (i32, i32) {
    %c0_i32 = arith.constant 0 : i32
    %c0_i32_0 = arith.constant 0 : i32
    %c0_i32_1 = arith.constant 0 : i32
    return %c0_i32, %c0_i32_0 : i32, i32
  }
  func.func @transform_6(%arg0: i32, %arg1: i32) -> (i32, i32) {
    %c0_i32 = arith.constant 0 : i32
    %c0_i32_0 = arith.constant 0 : i32
    %c0_i32_1 = arith.constant 0 : i32
    return %c0_i32, %c0_i32_0 : i32, i32
  }
  func.func @transform_7(%arg0: i32, %arg1: i32) -> (i32, i32) {
    %c0_i32 = arith.constant 0 : i32
    %c0_i32_0 = arith.constant 0 : i32
    %c0_i32_1 = arith.constant 0 : i32
    return %c0_i32, %c0_i32_0 : i32, i32
  }
  func.func @transform_8(%arg0: i32, %arg1: i32) -> (i32, i32) {
    %c0_i32 = arith.constant 0 : i32
    %c0_i32_0 = arith.constant 0 : i32
    %c0_i32_1 = arith.constant 0 : i32
    return %c0_i32, %c0_i32_0 : i32, i32
  }
  func.func @transform_9(%arg0: i32, %arg1: i32) -> (i32, i32) {
    %c0_i32 = arith.constant 0 : i32
    %c0_i32_0 = arith.constant 0 : i32
    %c0_i32_1 = arith.constant 0 : i32
    return %c0_i32, %c0_i32_0 : i32, i32
  }
  func.func @transform_10(%arg0: i32, %arg1: i32) -> (i32, i32) {
    %c0_i32 = arith.constant 0 : i32
    %c0_i32_0 = arith.constant 0 : i32
    %c0_i32_1 = arith.constant 0 : i32
    return %c0_i32, %c0_i32_0 : i32, i32
  }
  func.func @transform_11(%arg0: i32, %arg1: i32) -> (i32, i32) {
    %c0_i32 = arith.constant 0 : i32
    %c0_i32_0 = arith.constant 0 : i32
    %c0_i32_1 = arith.constant 0 : i32
    return %c0_i32, %c0_i32_0 : i32, i32
  }
  func.func @transform_12(%arg0: i32, %arg1: i32) -> (i32, i32) {
    %c0_i32 = arith.constant 0 : i32
    %c0_i32_0 = arith.constant 0 : i32
    %c0_i32_1 = arith.constant 0 : i32
    return %c0_i32, %c0_i32_0 : i32, i32
  }
  func.func @transform_13(%arg0: i32, %arg1: i32) -> (i32, i32, i32) {
    %c0_i32 = arith.constant 0 : i32
    %c0_i32_0 = arith.constant 0 : i32
    return %arg0, %c0_i32, %arg1 : i32, i32, i32
  }
}

</mosaic_0001>

<bundles_post_ra>
// kernel: tpu_custom_call.1
= control target key start
LH: loop header
LB: loop body
LE: loop exit
PB: predicated region body
PF: predicated region fallthrough
CT: control target
= control target key end

     0   :  { %s1460_s25 = smov 0   ;;  %s1462_s26 = smov 0   ;;  %s1732_s0 = inlined_call_operand.vmem [shape: f32[2,3,16], index: 0, kind: input, shape index: {}]   ;;  %s1733_s1 = inlined_call_operand.vmem [shape: f32[2,64,1], index: 1, kind: input, shape index: {}]   ;;  %s1734_s2 = inlined_call_operand.vmem [shape: f32[2,64,1], index: 2, kind: input, shape index: {}]   ;;  %s1735_s3 = inlined_call_operand.vmem [shape: f32[64,3], index: 3, kind: input, shape index: {}]   ;;  %s1736_s4 = inlined_call_operand.vmem [shape: f32[32,64], index: 4, kind: input, shape index: {}]   ;;  %s1737_s5 = inlined_call_operand.vmem [shape: f32[32,1], index: 5, kind: input, shape index: {}]   ;;  %s1738_s6 = inlined_call_operand.vmem [shape: f32[3,32], index: 6, kind: input, shape index: {}]   ;;  %s1739_s7 = inlined_call_operand.vmem [shape: f32[3,1], index: 7, kind: input, shape index: {}]   ;;  %s1740_s8 = inlined_call_operand.vmem [shape: f32[64,3], index: 8, kind: input, shape index: {}]   ;;  %s1741_s9 = inlined_call_operand.vmem [shape: f32[32,64], index: 9, kind: input, shape index: {}]   ;;  %s1742_s10 = inlined_call_operand.vmem [shape: f32[32,1], index: 10, kind: input, shape index: {}]   ;;  %s1743_s11 = inlined_call_operand.vmem [shape: f32[3,32], index: 11, kind: input, shape index: {}]   ;;  %s1744_s12 = inlined_call_operand.vmem [shape: f32[3,1], index: 12, kind: input, shape index: {}]   ;;  %s1745_s13 = inlined_call_operand.vmem [shape: f32[2,3,16], index: 13, kind: output, shape index: {}]  }
   0x1   :  { %s1464_s27 = smov 0  }
   0x2 LB: > { %s35_s28 = sadd.s32 1, %s1381_s26  ;;  %p1258_p0 = scmp.ge.s32.totalorder %s1385_s27, 1  ;;  %s1385_s27 = sphi %s1464_s27, %s23_s27   ;;  %s1381_s26 = sphi %s1462_s26, %s1747_s26   ;;  %s1377_s25 = sphi %s1460_s25, %s1746_s25  }
   0x3   : > { %p37_p1 = scmp.ge.s32.totalorder %s35_s28, 2  ;;  %p425_p2 = scmp.lt.s32.totalorder %s1385_s27, 3 }
   0x5   : > { %s1749_s28 = smov (%p37_p1, %s35_s28), 0  ;;  %p426_p3 = pnand %p1258_p0, %p425_p2 }
   0x6   : > { %p483_p4 = scmp.lt.s32.totalorder (!%p426_p3), %s1377_s25, 1 }
   0x7   : > { %429 = sbr.rel (%p426_p3) target bundleno = 837 (0x345), region = 72 }
   0xc   : > { %v515_v0 = vld [vmem:[%s1735_s3 + $0x38] sm:$0xff]  ;;  %v514_v1 = vld [vmem:[%s1735_s3 + $0x30] sm:$0xff]  ;;  %v1387_v2 = vmov 2   ;;  %v1388_v3 = vmov 1   ;;  %v1389_v4 = vmov 0   ;;  %v513_v6 = vld [vmem:[%s1735_s3 + $0x28] sm:$0xff] }
   0xd   : > { %1325 = vset.pattern.permute.xlu2 %v1387_v2  ;;  %1322 = vset.pattern.permute.xlu0 %v1388_v3  ;;  %v511_v5 = vld [vmem:[%s1735_s3 + $0x18] sm:$0xff]  ;;  %s1751_s25 = smov (!%p483_p4, %s1377_s25), 1  ;;  %v512_v7 = vld [vmem:[%s1735_s3 + $0x20] sm:$0xff]  ;;  %v510_v11 = vld [vmem:[%s1735_s3 + $0x10] sm:$0xff]  ;;  %vm755_vm0 = vcmask 523264   ;;  %vm808_vm1 = vcmask 261120  }
   0xe   : > { %1323 = vset.pattern.permute.xlu1 %v1389_v4  ;;  %643 = vperm.xlu2 %1325, %v515_v0   ;;  %s1277_s22 = sshll.u32 %s1751_s25, 6  ;;  %v508_v12 = vld [vmem:[%s1735_s3] sm:$0xff]  ;;  %v509_v14 = vld [vmem:[%s1735_s3 + $0x8] sm:$0xff]  ;;  %v734_v21 = vld [vmem:[%s1737_s5 + $0x18] sm:$0xff]  ;;  %s1259_s19 = sshll.u32 %s1751_s25, 2  ;;  %vm1154_vm2 = vcmask 124928  }
   0xf   : > { %594 = vperm.xlu0 %1322, %v515_v0   ;;  %548 = vperm.xlu1 %1323, %v514_v1   ;;  %s1512_s29 = scalar_lea.vmem %s1733_s1, %s1277_s22  ;;  %v732_v23 = vld [vmem:[%s1737_s5 + $0x8] sm:$0xff]  ;;  %v731_v24 = vld [vmem:[%s1737_s5] sm:$0xff]  ;;  %v1563_v29 = vld [vmem:[%s1740_s8 + $0x38] sm:$0xff]  ;;  %s489_s23 = scalar_lea.vmem %s1732_s0, %s1259_s19 }
  0x10   : > { %v670_v8 = vld [vmem:[%s1512_s29 + $0x38] sm:$0xff]  ;;  %v667_v9 = vld [vmem:[%s1512_s29 + $0x20] sm:$0xff]  ;;  %v669_v10 = vld [vmem:[%s1512_s29 + $0x30] sm:$0xff]  ;;  %s1636_s14 = scalar_lea.vmem %s1734_s2, %s1277_s22 }
  0x11   : > { %v668_v13 = vld [vmem:[%s1512_s29 + $0x28] sm:$0xff]  ;;  %v666_v15 = vld [vmem:[%s1512_s29 + $0x18] sm:$0xff]  ;;  %v665_v17 = vld [vmem:[%s1512_s29 + $0x10] sm:$0xff] }
  0x12   : > { %v664_v18 = vld [vmem:[%s1512_s29 + $0x8] sm:$0xff]  ;;  %v663_v20 = vld [vmem:[%s1512_s29] sm:$0xff]  ;;  %v838_v32 = vld [vmem:[%s1740_s8 + $0x30] sm:$0xff] }
  0x13   : > { %v802_v28 = vld [vmem:[%s1739_s7] sm:$0x7] }
  0x14   : > { %v507_v35 = vld [vmem:[%s489_s23] sm:$0x7] }
  0x15   : > { %v1576_v36 = vperm.slane %v507_v35, 1  ;;  %v1579_v39 = vperm.slane %v507_v35, 0  ;;  %v1586_v44 = vperm.slane %v507_v35, 2 }
  0x16   : > { %1326 = vset.pattern.permute.xlu2 %v1389_v4 }
  0x17   : > { %1324 = vset.pattern.permute.xlu1 %v1388_v3  ;;  %578 = vperm.xlu0 %1322, %v511_v5  }
  0x18   : > { %590 = vperm.xlu1 %1324, %v514_v1   ;;  %543 = vperm.xlu2 %1326, %v513_v6  }
  0x1f   : > { %1330 = vset.pattern.permute.xlu0 %v1389_v4 }
  0x20   : > { %586 = vperm.xlu1 %1324, %v513_v6   ;;  %1327 = vset.pattern.permute.xlu2 %v1387_v2 }
  0x21   : > { %553 = vperm.xlu0 %1330, %v515_v0   ;;  %639 = vperm.xlu2 %1327, %v514_v1  }
  0x28   : > { %582 = vperm.xlu1 %1324, %v512_v7  }
  0x29   : > { %538 = vperm.xlu0 %1330, %v512_v7   ;;  %635 = vperm.xlu2 %1327, %v513_v6  }
  0x30   : > { %1328 = vset.pattern.permute.xlu1 %v1389_v4 }
  0x31   : > { %1329 = vset.pattern.permute.xlu2 %v1389_v4  ;;  %708 = vperm.xlu1 %1328, %v670_v8  }
  0x32   : > { %693 = vperm.xlu0 %1330, %v667_v9   ;;  %533 = vperm.xlu2 %1329, %v511_v5  }
  0x39   : > { %1331 = vset.pattern.permute.xlu1 %v1387_v2 }
  0x3a   : > { %1337 = vset.pattern.permute.xlu0 %v1387_v2  ;;  %631 = vperm.xlu1 %1331, %v512_v7  }
  0x3b   : > { %703 = vperm.xlu2 %1329, %v669_v10   ;;  %627 = vperm.xlu0 %1337, %v511_v5  }
  0x42   : > { %1332 = vset.pattern.permute.xlu1 %v1389_v4 }
  0x43   : > { %1333 = vset.pattern.permute.xlu2 %v1388_v3  ;;  %528 = vperm.xlu1 %1332, %v510_v11  }
  0x44   : > { %574 = vperm.xlu2 %1333, %v510_v11   ;;  %615 = vperm.xlu0 %1337, %v508_v12  }
  0x4b   : > { %698 = vperm.xlu1 %1332, %v668_v13  }
  0x4c   : > { %1334 = vset.pattern.permute.xlu2 %v1389_v4  ;;  %1343 = vset.pattern.permute.xlu0 %v1389_v4 }
  0x4d   : > { %523 = vperm.xlu2 %1334, %v509_v14  }
  0x53   : > { %1335 = vset.pattern.permute.xlu1 %v1388_v3 }
  0x54   : > { %570 = vperm.xlu1 %1335, %v509_v14  }
  0x55   : > { %1336 = vset.pattern.permute.xlu2 %v1387_v2 }
  0x56   : > { %623 = vperm.xlu2 %1336, %v510_v11  }
  0x5c   : > { %1338 = vset.pattern.permute.xlu1 %v1389_v4 }
  0x5d   : > { %518 = vperm.xlu1 %1338, %v508_v12  }
  0x5e   : > { %1339 = vset.pattern.permute.xlu2 %v1388_v3 }
  0x5f   : > { %566 = vperm.xlu2 %1339, %v508_v12  }
  0x65   : > { %1340 = vset.pattern.permute.xlu1 %v1387_v2 }
  0x66   : > { %619 = vperm.xlu1 %1340, %v509_v14  }
  0x67   : > { %1341 = vset.pattern.permute.xlu2 %v1389_v4 }
  0x68   : > { %688 = vperm.xlu2 %1341, %v666_v15   ;;  %v644_v16 = vpop.permute.xlu2 %643 }
  0x69   : > { %v654_v50 = vmul.f32 %v1586_v44, %v644_v16 }
  0x6e   : > { %1342 = vset.pattern.permute.xlu1 %v1389_v4 }
  0x6f   : > { %683 = vperm.xlu1 %1342, %v665_v17  }
  0x70   : > { %678 = vperm.xlu2 %1341, %v664_v18  }
  0x72   : > { %v1545_v19 = vpop.permute.xlu2 %543 }
  0x73   : > { %v562_v6 = vmul.f32 %v1579_v39, %v1545_v19 }
  0x77   : > { %673 = vperm.xlu1 %1342, %v663_v20  }
  0x78   : > { %752 = vperm.xlu2 %1341, %v734_v21  }
  0x7b   : > { %v640_v22 = vpop.permute.xlu2 %639 }
  0x7c   : > { %v653_v46 = vmul.f32 %v1586_v44, %v640_v22 }
  0x7f   : > { %742 = vperm.xlu1 %1342, %v732_v23  }
  0x80   : > { %737 = vperm.xlu2 %1341, %v731_v24  }
  0x81   : > { %v549_v25 = vpop.permute.xlu1 %548  ;;  %v595_v26 = vpop.permute.xlu0 %594 }
  0x82   : > { %v605_v40 = vmul.f32 %v1576_v36, %v595_v26  ;;  %v563_v45 = vmul.f32 %v1579_v39, %v549_v25 }
  0x83   : > { %v636_v27 = vpop.permute.xlu2 %635 }
  0x84   : > { %v652_v8 = vmul.f32 %v1586_v44, %v636_v27 }
  0x87   : > { %805 = vperm.xlu1 %1342, %v802_v28  }
  0x88   : > { %877 = vperm.xlu2 %1341, %v1563_v29  }
  0x89   : > { %v579_v33 = vpop.permute.xlu0 %578 }
  0x8a   : > { %v591_v30 = vpop.permute.xlu1 %590  ;;  %v601_v11 = vmul.f32 %v1576_v36, %v579_v33 }
  0x8b   : > { %v604_v41 = vmul.f32 %v1576_v36, %v591_v30 }
  0x8c   : > { %v534_v31 = vpop.permute.xlu2 %533 }
  0x8d   : > { %v612_v47 = vadd.f32 %v604_v41, %v563_v45  ;;  %v560_v12 = vmul.f32 %v1579_v39, %v534_v31 }
  0x8f   : > { %872 = vperm.xlu1 %1342, %v838_v32   ;;  %v661_v51 = vadd.f32 %v653_v46, %v612_v47  ;;  %v609_v17 = vadd.f32 %v601_v11, %v560_v12 }
  0x90   : > { %1345 = vset.pattern.permute.xlu2 %v1388_v3 }
  0x91   : > { %914 = vperm.xlu2 %1345, %v838_v32  }
  0x92   : > { %v587_v34 = vpop.permute.xlu1 %586 }
  0x93   : > { %v554_v38 = vpop.permute.xlu0 %553  ;;  %v603_v63 = vmul.f32 %v1576_v36, %v587_v34 }
  0x94   : > { %v564_v42 = vmul.f32 %v1579_v39, %v554_v38 }
  0x95   : > { %v704_v37 = vpop.permute.xlu2 %703  ;;  %v611_v9 = vadd.f32 %v603_v63, %v562_v6  ;;  %v994_v63 = vld [vmem:[%s1636_s14 + $0x38] sm:$0xff]  ;;  %v833_v6 = vld [vmem:[%s1740_s8 + $0x8] sm:$0xff] }
  0x96   : > { %v613_v48 = vadd.f32 %v605_v40, %v564_v42  ;;  %v717_v54 = vadd.f32 %v704_v37, %v661_v51  ;;  %v837_v51 = vld [vmem:[%s1740_s8 + $0x28] sm:$0xff] }
  0x97   : > { %1346 = vset.pattern.permute.xlu1 %v1387_v2  ;;  %v660_v16 = vadd.f32 %v652_v8, %v611_v9  ;;  %v992_v8 = vld [vmem:[%s1636_s14 + $0x28] sm:$0xff]  ;;  %v832_v9 = vld [vmem:[%s1740_s8] sm:$0xff] }
  0x98   : > { %967 = vperm.xlu1 %1346, %v1563_v29   ;;  %v662_v52 = vadd.f32 %v654_v50, %v613_v48  ;;  %v725_v58 = vmax.f32 %v717_v54, 0.0  ;;  %v733_v50 = vld [vmem:[%s1737_s5 + $0x10] sm:$0xff] }
  0x99   : > { %1347 = vset.pattern.permute.xlu2 %v1389_v4  ;;  %747 = vperm.xlu0 %1343, %v733_v50  }
  0x9a   : > { %v583_v43 = vpop.permute.xlu1 %582  ;;  %867 = vperm.xlu2 %1347, %v837_v51  }
  0x9b   : > { %v539_v59 = vpop.permute.xlu0 %538  ;;  %v602_v0 = vmul.f32 %v1576_v36, %v583_v43 }
  0x9c   : > { %v561_v1 = vmul.f32 %v1579_v39, %v539_v59  ;;  %v836_v59 = vld [vmem:[%s1740_s8 + $0x20] sm:$0xff] }
  0x9e   : > { %v575_v49 = vpop.permute.xlu2 %574  ;;  %v610_v10 = vadd.f32 %v602_v0, %v561_v1  ;;  %v728_v0 = vld [vmem:[%s1736_s4 + $0x8] sm:$0xff]  ;;  %v729_v1 = vld [vmem:[%s1736_s4 + $0x10] sm:$0xff] }
  0x9f   : > { %v600_v31 = vmul.f32 %v1576_v36, %v575_v49 }
  0xa0   : > { %963 = vperm.xlu1 %1346, %v838_v32  }
  0xa1   : > { %1344 = vset.pattern.permute.xlu0 %v1388_v3 }
  0xa2   : > { %918 = vperm.xlu0 %1344, %v1563_v29   ;;  %862 = vperm.xlu2 %1347, %v836_v59   ;;  %v993_v29 = vld [vmem:[%s1636_s14 + $0x30] sm:$0xff] }
  0xa3   : > { %v709_v53 = vpop.permute.xlu1 %708 }
  0xa4   : > { %v718_v55 = vadd.f32 %v709_v53, %v662_v52  ;;  %v694_v61 = vpop.permute.xlu0 %693 }
  0xa6   : > { %v726_v56 = vmax.f32 %v718_v55, 0.0 }
  0xa7   : > { %v524_v57 = vpop.permute.xlu2 %523 }
  0xa8   : > { %776 = vmatpush.msra.mxu0 %v726_v56  ;;  %1279 = vmatpush.msra.mxu1 %v726_v56  ;;  %v558_v35 = vmul.f32 %v1579_v39, %v524_v57  ;;  %v835_v57 = vld [vmem:[%s1740_s8 + $0x18] sm:$0xff] }
  0xa9   : > { %959 = vperm.xlu1 %1346, %v837_v51  }
  0xaa   : > { %777 = vmatpush.msra.mxu0 %v725_v58  ;;  %1280 = vmatpush.msra.mxu1 %v725_v58 }
  0xab   : > { %910 = vperm.xlu0 %1344, %v837_v51   ;;  %1032 = vperm.xlu2 %1347, %v994_v63  }
  0xac   : > { %v632_v60 = vpop.permute.xlu1 %631 }
  0xad   : > { %v651_v7 = vmul.f32 %v1586_v44, %v632_v60  ;;  %v628_v15 = vpop.permute.xlu0 %627 }
  0xae   : > { %v650_v18 = vmul.f32 %v1586_v44, %v628_v15 }
  0xaf   : > { %v659_v14 = vadd.f32 %v651_v7, %v610_v10  ;;  %v991_v7 = vld [vmem:[%s1636_s14 + $0x20] sm:$0xff]  ;;  %v990_v10 = vld [vmem:[%s1636_s14 + $0x18] sm:$0xff] }
  0xb0   : > { %v624_v62 = vpop.permute.xlu2 %623  ;;  %v658_v23 = vadd.f32 %v650_v18, %v609_v17  ;;  %v988_v17 = vld [vmem:[%s1636_s14 + $0x8] sm:$0xff] }
  0xb1   : > { %v715_v19 = vadd.f32 %v694_v61, %v659_v14  ;;  %v649_v38 = vmul.f32 %v1586_v44, %v624_v62  ;;  %1348 = vset.pattern.permute.xlu1 %v1388_v3  ;;  %v727_v61 = vld [vmem:[%s1736_s4] sm:$0xff]  ;;  %v730_v62 = vld [vmem:[%s1736_s4 + $0x18] sm:$0xff] }
  0xb2   : > { %902 = vperm.xlu1 %1348, %v835_v57  }
  0xb3   : > { %v723_v25 = vmax.f32 %v715_v19, 0.0  ;;  %906 = vperm.xlu0 %1344, %v836_v59   ;;  %1349 = vset.pattern.permute.xlu2 %v1387_v2 }
  0xb4   : > { %955 = vperm.xlu2 %1349, %v836_v59  }
  0xb5   : > { %v529_v5 = vpop.permute.xlu1 %528 }
  0xb6   : > { %v559_v32 = vmul.f32 %v1579_v39, %v529_v5  ;;  %v616_v46 = vpop.permute.xlu0 %615  ;;  %v834_v5 = vld [vmem:[%s1740_s8 + $0x10] sm:$0xff] }
  0xb8   : > { %v608_v40 = vadd.f32 %v600_v31, %v559_v32  ;;  %v801_v31 = vld [vmem:[%s1738_s6] sm:$0x7] }
  0xb9   : > { %v567_v13 = vpop.permute.xlu2 %566  ;;  %v1125_v32 = vld [vmem:[%s1744_s12] sm:$0x7] }
  0xba   : > { %v598_v43 = vmul.f32 %v1576_v36, %v567_v13  ;;  %v657_v47 = vadd.f32 %v649_v38, %v608_v40  ;;  %1350 = vset.pattern.permute.xlu1 %v1389_v4 }
  0xbb   : > { %1027 = vperm.xlu1 %1350, %v993_v29   ;;  %898 = vperm.xlu0 %1344, %v834_v5  }
  0xbc   : > { %1351 = vset.pattern.permute.xlu2 %v1389_v4 }
  0xbd   : > { %v699_v20 = vpop.permute.xlu1 %698  ;;  %852 = vperm.xlu2 %1351, %v834_v5  }
  0xbe   : > { %v716_v21 = vadd.f32 %v699_v20, %v660_v16  ;;  %v1058_v16 = vld [vmem:[%s1742_s10 + $0x18] sm:$0xff] }
  0xc0   : > { %v724_v22 = vmax.f32 %v716_v21, 0.0  ;;  %v1057_v21 = vld [vmem:[%s1742_s10 + $0x10] sm:$0xff] }
  0xc2   : > { %v689_v24 = vpop.permute.xlu2 %688  ;;  %778 = vmatpush.msra.mxu0 %v724_v22  ;;  %1281 = vmatpush.msra.mxu1 %v724_v22 }
  0xc3   : > { %v714_v26 = vadd.f32 %v689_v24, %v658_v23  ;;  %1352 = vset.pattern.permute.xlu1 %v1387_v2  ;;  %1355 = vset.pattern.permute.xlu0 %v1387_v2 }
  0xc4   : > { %779 = vmatpush.msra.mxu0 %v723_v25  ;;  %1282 = vmatpush.msra.mxu1 %v723_v25 }
  0xc5   : > { %v722_v27 = vmax.f32 %v714_v26, 0.0  ;;  %951 = vperm.xlu1 %1352, %v835_v57   ;;  %947 = vperm.xlu0 %1355, %v834_v5  }
  0xc6   : > { %v571_v28 = vpop.permute.xlu1 %570  ;;  %1022 = vperm.xlu2 %1351, %v992_v8  }
  0xc7   : > { %780 = vmatpush.msra.mxu0 %v722_v27  ;;  %1283 = vmatpush.msra.mxu1 %v722_v27  ;;  %v599_v33 = vmul.f32 %v1576_v36, %v571_v28 }
  0xc9   : > { %v607_v41 = vadd.f32 %v599_v33, %v558_v35  ;;  %v987_v33 = vld [vmem:[%s1636_s14] sm:$0xff] }
  0xca   : > { %v679_v48 = vpop.permute.xlu2 %678 }
  0xcd   : > { %1353 = vset.pattern.permute.xlu1 %v1389_v4  ;;  %1356 = vset.pattern.permute.xlu0 %v1389_v4 }
  0xce   : > { %847 = vperm.xlu1 %1353, %v833_v6   ;;  %857 = vperm.xlu0 %1356, %v835_v57  }
  0xcf   : > { %v519_v30 = vpop.permute.xlu1 %518  ;;  %1354 = vset.pattern.permute.xlu2 %v1388_v3 }
  0xd0   : > { %v557_v45 = vmul.f32 %v1579_v39, %v519_v30  ;;  %v647_v39 = vmul.f32 %v1586_v44, %v616_v46  ;;  %894 = vperm.xlu2 %1354, %v833_v6  }
  0xd2   : > { %v606_v36 = vadd.f32 %v598_v43, %v557_v45  ;;  %v753_v11 = vpop.permute.xlu2 %752 }
  0xd4   : > { %v655_v56 = vadd.f32 %v647_v39, %v606_v36 }
  0xd6   : > { %1017 = vperm.xlu1 %1353, %v991_v7   ;;  %1012 = vperm.xlu0 %1356, %v990_v10  }
  0xd8   : > { %v620_v34 = vpop.permute.xlu1 %619  ;;  %1357 = vset.pattern.permute.xlu2 %v1389_v4 }
  0xd9   : > { %v648_v37 = vmul.f32 %v1586_v44, %v620_v34  ;;  %842 = vperm.xlu2 %1357, %v832_v9   ;;  %v1056_v34 = vld [vmem:[%s1742_s10 + $0x8] sm:$0xff] }
  0xda   : > { %v738_v25 = vpop.permute.xlu2 %737 }
  0xdb   : > { %v656_v42 = vadd.f32 %v648_v37, %v607_v41 }
  0xdd   : > { %v712_v53 = vadd.f32 %v679_v48, %v656_v42 }
  0xde   : > { %1358 = vset.pattern.permute.xlu1 %v1388_v3  ;;  %1076 = vperm.xlu0 %1356, %v1058_v16   ;;  %v1055_v3 = vld [vmem:[%s1742_s10] sm:$0xff] }
  0xdf   : > { %v720_v55 = vmax.f32 %v712_v53, 0.0  ;;  %890 = vperm.xlu1 %1358, %v832_v9  }
  0xe1   : > { %v684_v49 = vpop.permute.xlu1 %683  ;;  %1359 = vset.pattern.permute.xlu2 %v1387_v2 }
  0xe2   : > { %v713_v52 = vadd.f32 %v684_v49, %v657_v47  ;;  %943 = vperm.xlu2 %1359, %v833_v6   ;;  %v878_v37 = vpop.permute.xlu2 %877 }
  0xe4   : > { %v721_v54 = vmax.f32 %v713_v52, 0.0 }
  0xe6   : > { %781 = vmatpush.msra.mxu0 %v721_v54  ;;  %1284 = vmatpush.msra.mxu1 %v721_v54 }
  0xe7   : > { %1360 = vset.pattern.permute.xlu1 %v1387_v2  ;;  %1061 = vperm.xlu0 %1356, %v1055_v3   ;;  %v989_v2 = vld [vmem:[%s1636_s14 + $0x10] sm:$0xff]  ;;  %s506_s14 = scalar_lea.vmem %s1745_s13, %s1259_s19 }
  0xe8   : > { %782 = vmatpush.msra.mxu0 %v720_v55  ;;  %1285 = vmatpush.msra.mxu1 %v720_v55 }
  0xe9   : > { %v674_v58 = vpop.permute.xlu1 %673  ;;  %939 = vperm.xlu1 %1360, %v832_v9  }
  0xea   : > { %v711_v60 = vadd.f32 %v674_v58, %v655_v56  ;;  %1361 = vset.pattern.permute.xlu2 %v1389_v4 }
  0xeb   : > { %1007 = vperm.xlu2 %1361, %v989_v2   ;;  %v915_v40 = vpop.permute.xlu2 %914 }
  0xec   : > { %v719_v44 = vmax.f32 %v711_v60, 0.0 }
  0xee   : > { %783 = vmatpush.msra.mxu0 %v719_v44  ;;  %1286 = vmatpush.msra.mxu1 %v719_v44 }
  0xef   : > { %1265 = vmatmul.msk.f32.vlgmr.msra.gmra.mxu0 %vm755_vm0, %v727_v61  ;;  %1268 = vmatmul.msk.f32.vlgmr.msra.gmra.mxu1 %vm755_vm0, %v730_v62 }
  0xf1   : > { %1362 = vset.pattern.permute.xlu1 %v1389_v4  ;;  %v743_v19 = vpop.permute.xlu1 %742 }
  0xf2   : > { %1002 = vperm.xlu1 %1362, %v988_v17  }
  0xf3   : > { %997 = vperm.xlu2 %1361, %v987_v33  }
  0xf4   : > { %v868_v42 = vpop.permute.xlu2 %867 }
  0xf7   : > { %1266 = vmatmul.msk.f32.gmra.mxu0 %vm755_vm0, %v728_v0 }
  0xf9   : > { %v806_v35 = vpop.permute.xlu1 %805 }
  0xfa   : > { %1071 = vperm.xlu1 %1362, %v1057_v21  }
  0xfb   : > { %1066 = vperm.xlu2 %1361, %v1056_v34  }
  0xfc   : > { %v863_v45 = vpop.permute.xlu2 %862 }
  0xff   : > { %1267 = vmatmul.msk.f32.gmra.mxu0 %vm755_vm0, %v729_v1 }
 0x101   : > { %v873_v38 = vpop.permute.xlu1 %872 }
 0x102   : > { %1128 = vperm.xlu1 %1362, %v1125_v32  }
 0x105   : > { %v1033_v47 = vpop.permute.xlu2 %1032 }
 0x10a   : > { %v968_v41 = vpop.permute.xlu1 %967 }
 0x10b   : > { %v748_v20 = vpop.permute.xlu0 %747 }
 0x10e   : > { %v956_v4 = vpop.permute.xlu2 %955 }
 0x112   : > { %v964_v43 = vpop.permute.xlu1 %963 }
 0x114   : > { %v919_v49 = vpop.permute.xlu0 %918 }
 0x117   : > { %v853_v51 = vpop.permute.xlu2 %852 }
 0x11b   : > { %v960_v46 = vpop.permute.xlu1 %959 }
 0x11d   : > { %v911_v52 = vpop.permute.xlu0 %910 }
 0x120   : > { %v1023_v36 = vpop.permute.xlu2 %1022 }
 0x124   : > { %v903_v48 = vpop.permute.xlu1 %902 }
 0x125   : > { %v907_v39 = vpop.permute.xlu0 %906 }
 0x12a   : > { %v895_v55 = vpop.permute.xlu2 %894 }
 0x12d   : > { %v1028_v50 = vpop.permute.xlu1 %1027  ;;  %v899_v56 = vpop.permute.xlu0 %898 }
 0x133   : > { %v843_v58 = vpop.permute.xlu2 %842 }
 0x137   : > { %v952_v53 = vpop.permute.xlu1 %951  ;;  %v948_v59 = vpop.permute.xlu0 %947 }
 0x13c   : > { %v944_v62 = vpop.permute.xlu2 %943 }
 0x140   : > { %v848_v54 = vpop.permute.xlu1 %847  ;;  %v858_v8 = vpop.permute.xlu0 %857 }
 0x148   : > { %v1018_v57 = vpop.permute.xlu1 %1017 }
 0x151   : > { %v891_v44 = vpop.permute.xlu1 %890 }
 0x15b   : > { %v940_v21 = vpop.permute.xlu1 %939 }
 0x16c   : > { %v785_v12 = vpop.f32.mrf.mxu0  ;;  %v794_v13 = vpop.f32.mrf.mxu1 }
 0x16d   : > { %v795_v14 = vadd.f32 %v794_v13, %v753_v11  ;;  %v786_v26 = vadd.f32 %v785_v12, %v738_v25 }
 0x16f   : > { %v800_v15 = vmax.f32 %v795_v14, 0.0  ;;  %v797_v30 = vmax.f32 %v786_v26, 0.0 }
 0x171   : > { %824 = vmatpush.msrb.mxu1 %v800_v15 }
 0x174   : > { %v788_v18 = vpop.f32.mrf.mxu0 }
 0x175   : > { %v789_v23 = vadd.f32 %v788_v18, %v743_v19 }
 0x177   : > { %v798_v28 = vmax.f32 %v789_v23, 0.0 }
 0x17c   : > { %v791_v22 = vpop.f32.mrf.mxu0 }
 0x17d   : > { %v792_v24 = vadd.f32 %v791_v22, %v748_v20 }
 0x17f   : > { %v799_v27 = vmax.f32 %v792_v24, 0.0 }
 0x181   : > { %825 = vmatpush.msrb.mxu1 %v799_v27 }
 0x183   : > { %826 = vmatpush.msrb.mxu1 %v798_v28 }
 0x185   : > { %827 = vmatpush.msrb.mxu1 %v797_v30  ;;  %v1008_v30 = vpop.permute.xlu2 %1007 }
 0x186   : > { %1269 = vmatmul.msk.f32.vlgmr.msrb.gmra.mxu1 %vm808_vm1, %v801_v31 }
 0x203   : > { %v829_v60 = vpop.f32.mrf.mxu1 }
 0x204   : > { %v830_v61 = vadd.f32 %v829_v60, %v806_v35 }
 0x206   : > { %v880_v29 = vperm.slane %v830_v61, 0  ;;  %v921_v63 = vperm.slane %v830_v61, 1  ;;  %v970_v0 = vperm.slane %v830_v61, 2 }
 0x208   : > { %v888_v1 = vmul.f32 %v880_v29, %v878_v37  ;;  %v929_v5 = vmul.f32 %v921_v63, %v919_v49  ;;  %v887_v6 = vmul.f32 %v880_v29, %v873_v38  ;;  %v928_v7 = vmul.f32 %v921_v63, %v915_v40 }
 0x209   : > { %v882_v9 = vmul.f32 %v880_v29, %v848_v54  ;;  %v978_v11 = vmul.f32 %v970_v0, %v968_v41  ;;  %v886_v12 = vmul.f32 %v880_v29, %v868_v42  ;;  %v923_v13 = vmul.f32 %v921_v63, %v895_v55 }
 0x20a   : > { %v937_v10 = vadd.f32 %v929_v5, %v888_v1  ;;  %v936_v14 = vadd.f32 %v928_v7, %v887_v6  ;;  %v977_v15 = vmul.f32 %v970_v0, %v964_v43  ;;  %v927_v16 = vmul.f32 %v921_v63, %v911_v52  ;;  %v1013_v52 = vpop.permute.xlu0 %1012  ;;  %v1052_v1 = vld [vmem:[%s1741_s9 + $0x8] sm:$0xff]  ;;  %v1053_v5 = vld [vmem:[%s1741_s9 + $0x10] sm:$0xff] }
 0x20b   : > { %v881_v17 = vmul.f32 %v880_v29, %v843_v58  ;;  %v885_v3 = vmul.f32 %v880_v29, %v863_v45  ;;  %v926_v20 = vmul.f32 %v921_v63, %v907_v39  ;;  %v922_v19 = vmul.f32 %v921_v63, %v891_v44  ;;  %v1003_v58 = vpop.permute.xlu1 %1002  ;;  %v998_v44 = vpop.permute.xlu2 %997 }
 0x20c   : > { %v986_v18 = vadd.f32 %v978_v11, %v937_v10  ;;  %v985_v22 = vadd.f32 %v977_v15, %v936_v14  ;;  %v935_v23 = vadd.f32 %v927_v16, %v886_v12  ;;  %v976_v24 = vmul.f32 %v970_v0, %v960_v46 }
 0x20d   : > { %v934_v26 = vadd.f32 %v926_v20, %v885_v3  ;;  %v975_v27 = vmul.f32 %v970_v0, %v956_v4  ;;  %v884_v28 = vmul.f32 %v880_v29, %v858_v8  ;;  %v925_v2 = vmul.f32 %v921_v63, %v903_v48 }
 0x20e   : > { %v1042_v25 = vadd.f32 %v1033_v47, %v986_v18  ;;  %v1041_v31 = vadd.f32 %v1028_v50, %v985_v22  ;;  %v984_v32 = vadd.f32 %v976_v24, %v935_v23  ;;  %v931_v33 = vadd.f32 %v923_v13, %v882_v9 }
 0x20f   : > { %v972_v34 = vmul.f32 %v970_v0, %v944_v62  ;;  %v983_v37 = vadd.f32 %v975_v27, %v934_v26  ;;  %v933_v40 = vadd.f32 %v925_v2, %v884_v28  ;;  %v974_v41 = vmul.f32 %v970_v0, %v952_v53 }
 0x210   : > { %v1050_v35 = vmax.f32 %v1042_v25, 0.0  ;;  %v1040_v38 = vadd.f32 %v1023_v36, %v984_v32  ;;  %v883_v42 = vmul.f32 %v880_v29, %v853_v51  ;;  %v930_v43 = vadd.f32 %v922_v19, %v881_v17  ;;  %v1124_v19 = vld [vmem:[%s1743_s11] sm:$0x7] }
 0x211   : > { %v1049_v45 = vmax.f32 %v1041_v31, 0.0  ;;  %v1039_v46 = vadd.f32 %v1018_v57, %v983_v37  ;;  %v924_v47 = vmul.f32 %v921_v63, %v899_v56  ;;  %v971_v4 = vmul.f32 %v970_v0, %v940_v21  ;;  %v1051_v63 = vld [vmem:[%s1741_s9] sm:$0xff] }
 0x212   : > { %1099 = vmatpush.msra.mxu2 %v1050_v35  ;;  %1287 = vmatpush.msra.mxu3 %v1050_v35  ;;  %v982_v49 = vadd.f32 %v974_v41, %v933_v40  ;;  %v980_v50 = vadd.f32 %v972_v34, %v931_v33  ;;  %v1048_v48 = vmax.f32 %v1040_v38, 0.0  ;;  %v973_v54 = vmul.f32 %v970_v0, %v948_v59  ;;  %v1054_v0 = vld [vmem:[%s1741_s9 + $0x18] sm:$0xff]  ;;  %v1077_v6 = vpop.permute.xlu0 %1076 }
 0x213   : > { %v932_v39 = vadd.f32 %v924_v47, %v883_v42  ;;  %v979_v36 = vadd.f32 %v971_v4, %v930_v43  ;;  %v1047_v51 = vmax.f32 %v1039_v46, 0.0  ;;  %v1072_v12 = vpop.permute.xlu1 %1071  ;;  %v1067_v13 = vpop.permute.xlu2 %1066 }
 0x214   : > { %1100 = vmatpush.msra.mxu2 %v1049_v45  ;;  %1288 = vmatpush.msra.mxu3 %v1049_v45  ;;  %v1038_v55 = vadd.f32 %v1013_v52, %v982_v49  ;;  %v1036_v60 = vadd.f32 %v1003_v58, %v980_v50 }
 0x215   : > { %v981_v53 = vadd.f32 %v973_v54, %v932_v39  ;;  %v1035_v61 = vadd.f32 %v998_v44, %v979_v36 }
 0x216   : > { %1101 = vmatpush.msra.mxu2 %v1048_v48  ;;  %1289 = vmatpush.msra.mxu3 %v1048_v48  ;;  %v1046_v56 = vmax.f32 %v1038_v55, 0.0  ;;  %v1044_v29 = vmax.f32 %v1036_v60, 0.0 }
 0x217   : > { %v1037_v57 = vadd.f32 %v1008_v30, %v981_v53  ;;  %v1043_v59 = vmax.f32 %v1035_v61, 0.0 }
 0x218   : > { %1102 = vmatpush.msra.mxu2 %v1047_v51  ;;  %1290 = vmatpush.msra.mxu3 %v1047_v51 }
 0x219   : > { %v1045_v62 = vmax.f32 %v1037_v57, 0.0 }
 0x21a   : > { %1103 = vmatpush.msra.mxu2 %v1046_v56  ;;  %1291 = vmatpush.msra.mxu3 %v1046_v56  ;;  %v1062_v17 = vpop.permute.xlu0 %1061 }
 0x21b   : > { %v1129_v22 = vpop.permute.xlu1 %1128 }
 0x21c   : > { %1104 = vmatpush.msra.mxu2 %v1045_v62  ;;  %1292 = vmatpush.msra.mxu3 %v1045_v62 }
 0x21e   : > { %1105 = vmatpush.msra.mxu2 %v1044_v29  ;;  %1293 = vmatpush.msra.mxu3 %v1044_v29 }
 0x220   : > { %1106 = vmatpush.msra.mxu2 %v1043_v59  ;;  %1294 = vmatpush.msra.mxu3 %v1043_v59 }
 0x221   : > { %1270 = vmatmul.msk.f32.vlgmr.msra.gmra.mxu2 %vm755_vm0, %v1051_v63  ;;  %1273 = vmatmul.msk.f32.vlgmr.msra.gmra.mxu3 %vm755_vm0, %v1054_v0 }
 0x229   : > { %1271 = vmatmul.msk.f32.gmra.mxu2 %vm755_vm0, %v1052_v1 }
 0x231   : > { %1272 = vmatmul.msk.f32.gmra.mxu2 %vm755_vm0, %v1053_v5 }
 0x2a4   : > { %v1108_v7 = vpop.f32.mrf.mxu2  ;;  %v1117_v8 = vpop.f32.mrf.mxu3 }
 0x2a5   : > { %v1118_v9 = vadd.f32 %v1117_v8, %v1077_v6  ;;  %v1109_v18 = vadd.f32 %v1108_v7, %v1062_v17 }
 0x2a7   : > { %v1123_v10 = vmax.f32 %v1118_v9, 0.0  ;;  %v1120_v21 = vmax.f32 %v1109_v18, 0.0 }
 0x2a9   : > { %1146 = vmatpush.msrb.mxu3 %v1123_v10 }
 0x2ac   : > { %v1111_v11 = vpop.f32.mrf.mxu2 }
 0x2ad   : > { %v1112_v15 = vadd.f32 %v1111_v11, %v1067_v13 }
 0x2af   : > { %v1121_v20 = vmax.f32 %v1112_v15, 0.0 }
 0x2b4   : > { %v1114_v14 = vpop.f32.mrf.mxu2 }
 0x2b5   : > { %v1115_v16 = vadd.f32 %v1114_v14, %v1072_v12 }
 0x2b7   : > { %v1122_v3 = vmax.f32 %v1115_v16, 0.0 }
 0x2b9   : > { %1147 = vmatpush.msrb.mxu3 %v1122_v3 }
 0x2bb   : > { %1148 = vmatpush.msrb.mxu3 %v1121_v20 }
 0x2bd   : > { %1149 = vmatpush.msrb.mxu3 %v1120_v21 }
 0x2be   : > { %1274 = vmatmul.msk.f32.vlgmr.msrb.gmra.mxu3 %vm808_vm1, %v1124_v19 }
 0x341   : > { %v1151_v23 = vpop.f32.mrf.mxu3 }
 0x342   : > { %v1152_v24 = vadd.f32 %v1151_v23, %v1129_v22 }
 0x344   : > { %1155 = vst.msk [vmem:[%s506_s14] sm:$0x7] %vm1154_vm2, %v1152_v24 }
 0x345 PF: > { %s23_s27 = sadd.s32 1, %s1385_s27   ;;  %s1746_s25 = smov %s1381_s26 }
 0x346   : > { %p20_p5 = scmp.ge.s32.totalorder %s23_s27, 4   ;;  %s1747_s26 = smov %s1749_s28 }
 0x348   :  { %22 = sbr.rel (!%p20_p5) target bundleno = 2 (0x2), region = 108 }

</bundles_post_ra>
